<compile_context>
chip_gen: v6e
topology: v6e:2x2x1
jax: 0.10.0
libtpu: 0.0.40
codegen_flags: <defaults>
</compile_context>

<pallas_src>
import functools

import jax
import jax.numpy as jnp
from jax import lax
from jax.experimental import pallas as pl
from jax.experimental.pallas import tpu as pltpu

ALPHA = 0.05
LANES = 128
SUBLANES = 8
TARGET_BLOCK_ROWS = 4096   # 4096*128*4B = 2 MiB per f32 input tile
NUM_SPLITS = 2             # leading "parallel" axis -> 2 TCs on v7x; cheap loop elsewhere
# TODO(synk): make NUM_SPLITS generation-aware (1 on single-TC v5e/v6e) once a stable
# in-API core-count query is available; the extra split only costs one (8,128) partial.


def _round_up(a, b):
    return -(-a // b) * b


def _loss_block(x, z, inv_alpha):
    """Elementwise BCE-blur loss for one f32 tile.

    Shares e = exp(-|x|) between the stable-BCE tail and sigmoid; replaces the exact
    EUP divide with approx reciprocal + one VALU-only Newton step (EUP is the binding
    VLIW slot on v7x); uses log(1+e) with den in (1, 2] (well conditioned, error per
    element < ~6e-8 which is negligible for the mean)."""
    e = jnp.exp(-jnp.abs(x))
    den = 1.0 + e
    bce = jnp.maximum(x, 0.0) - x * z + jnp.log(den)
    r = pl.reciprocal(den, approx=True)
    r = r * (2.0 - den * r)                      # one Newton step (pure VALU)
    p = jnp.where(x >= 0.0, 1.0, e) * r          # sigmoid(x)
    dx = p - z
    alpha_factor = 1.0 - jnp.exp((dx - 1.0) * inv_alpha)
    return bce * alpha_factor


def _bce_blur_sum_kernel(pred_ref, true_ref, acc_ref, *,
                         inv_alpha, block_rows, steps, rows_full):
    c = pl.program_id(0)          # parallel split (TC shard on v7x)
    i = pl.program_id(1)          # reduction axis ("arbitrary")
    b = c * steps + i             # global row-block index

    @pl.when(i == 0)
    def _init():
        acc_ref[...] = jnp.zeros_like(acc_ref)

    x = pred_ref[...].astype(jnp.float32)
    z = true_ref[...].astype(jnp.float32)

    def fold(loss):
        # Tile-aligned reshape + VPU fold into the resident (8,128) accumulator.
        acc_ref[...] += loss.reshape(-1, SUBLANES, LANES).sum(axis=0)

    is_full = (b + 1) * block_rows <= rows_full

    @pl.when(is_full)
    def _full_tile():
        fold(_loss_block(x, z, inv_alpha))

    @pl.when(jnp.logical_not(is_full))
    def _edge_tile():
        # Partial (or clamped-duplicate, fully-invalid) tile: mask rows >= rows_full.
        valid = rows_full - b * block_rows       # may be <= 0 for clamped blocks
        row_ids = lax.broadcasted_iota(jnp.int32, (block_rows, LANES), 0)
        m = row_ids < valid
        # Benign replacement values keep the transcendental chain NaN/Inf-free (their
        # loss is ~exp(-100), i.e. subnormal); the outer where makes it exactly 0.
        xm = jnp.where(m, x, 100.0)
        zm = jnp.where(m, z, 1.0)
        fold(jnp.where(m, _loss_block(xm, zm, inv_alpha), 0.0))


def bce_blur_with_logits_loss(pred, true, alpha=ALPHA):
    """Forward pass of BCEBlurWithLogitsLoss. pred/true: same shape. Returns mean loss."""
    assert pred.shape == true.shape
    n = pred.size
    assert n > 0
    inv_alpha = float(1.0 / (alpha + 1e-4))

    xf = pred.reshape(-1)
    zf = true.reshape(-1)

    rows_full = n // LANES
    rem = n - rows_full * LANES

    total = jnp.float32(0.0)

    if rows_full > 0:
        # bf16/fp16 inputs need (16,128) minimum tiles; f32 needs (8,128).
        gran = 16 if min(pred.dtype.itemsize, true.dtype.itemsize) < 4 else 8
        block_rows = min(TARGET_BLOCK_ROWS,
                         _round_up(_round_up(rows_full, NUM_SPLITS) // NUM_SPLITS, gran))
        n_blocks = -(-rows_full // block_rows)       # cdiv
        steps = -(-n_blocks // NUM_SPLITS)           # cdiv
        max_block = n_blocks - 1

        main = rows_full * LANES
        if rem:
            # Rare non-multiple-of-128 case: slice off only the tiny tail; never
            # concatenate/pad the full tensors (that would double HBM traffic).
            x2 = xf[:main].reshape(rows_full, LANES)
            z2 = zf[:main].reshape(rows_full, LANES)
        else:
            x2 = xf.reshape(rows_full, LANES)
            z2 = zf.reshape(rows_full, LANES)

        kernel = functools.partial(
            _bce_blur_sum_kernel, inv_alpha=inv_alpha, block_rows=block_rows,
            steps=steps, rows_full=rows_full)

        # Clamp block index so clamped-duplicate steps (when n_blocks % NUM_SPLITS != 0)
        # never DMA out of bounds; the kernel fully masks their contribution.
        idx = lambda c, i: (jnp.minimum(c * steps + i, max_block), 0)

        vmem_limit = int(2 * block_rows * LANES *
                         (pred.dtype.itemsize + true.dtype.itemsize) + (8 << 20))

        partials = pl.pallas_call(
            kernel,
            out_shape=jax.ShapeDtypeStruct((NUM_SPLITS, SUBLANES, LANES), jnp.float32),
            grid_spec=pltpu.PrefetchScalarGridSpec(
                num_scalar_prefetch=0,
                grid=(NUM_SPLITS, steps),
                in_specs=[
                    pl.BlockSpec((block_rows, LANES), idx),
                    pl.BlockSpec((block_rows, LANES), idx),
                ],
                out_specs=pl.BlockSpec((None, SUBLANES, LANES), lambda c, i: (c, 0, 0)),
            ),
            compiler_params=pltpu.CompilerParams(
                dimension_semantics=("parallel", "arbitrary"),
                vmem_limit_bytes=vmem_limit,
            ),
        )(x2, z2)
        total = total + jnp.sum(partials)

    if rem:
        # < 128 leftover elements: plain JAX, exact reference formula.
        xt = xf[rows_full * LANES:].astype(jnp.float32)
        zt = zf[rows_full * LANES:].astype(jnp.float32)
        e = jnp.exp(-jnp.abs(xt))
        bce = jnp.maximum(xt, 0.0) - xt * zt + jnp.log1p(e)
        p = jnp.where(xt >= 0.0, 1.0, e) / (1.0 + e)
        af = 1.0 - jnp.exp((p - zt - 1.0) * inv_alpha)
        total = total + jnp.sum(bce * af)

    return total / jnp.float32(n)


def bce_blur_with_logits_loss_ref(pred, true, alpha=ALPHA):
    """Pure-JAX reference mirroring the PyTorch module."""
    x = pred.astype(jnp.float32)
    z = true.astype(jnp.float32)
    bce = jnp.maximum(x, 0.0) - x * z + jnp.log1p(jnp.exp(-jnp.abs(x)))
    p = jax.nn.sigmoid(x)
    dx = p - z
    alpha_factor = 1.0 - jnp.exp((dx - 1.0) / (alpha + 1e-4))
    return jnp.mean(bce * alpha_factor)


if __name__ == "__main__":
    key = jax.random.PRNGKey(0)
    k1, k2 = jax.random.split(key)
    # NCHW logits and targets in [0, 1].
    shape = (2, 4, 16, 16)
    pred = jax.random.normal(k1, shape, dtype=jnp.float32) * 2.0
    true = jax.random.uniform(k2, shape, dtype=jnp.float32)

    out = jax.block_until_ready(bce_blur_with_logits_loss(pred, true))
    ref = bce_blur_with_logits_loss_ref(pred, true)
    assert jnp.allclose(out, ref, rtol=1e-4, atol=1e-6), (out, ref)
    print("KERNEL_OK")
</pallas_src>

<mosaic_0001>
module attributes {stable_mosaic.version = 11 : i64} {
  func.func @_bce_blur_sum_kernel(%arg0: i32, %arg1: i32, %arg2: memref<8x128xf32, #tpu.memory_space<vmem>>, %arg3: memref<8x128xf32, #tpu.memory_space<vmem>>, %arg4: memref<1x8x128xf32, #tpu.memory_space<vmem>>) attributes {dimension_semantics = [#tpu.dimension_semantics<parallel>, #tpu.dimension_semantics<arbitrary>], iteration_bounds = array<i64: 2, 1>, scalar_prefetch = 0 : i64, scratch_operands = 0 : i64, tpu.core_type = #tpu.core_type<tc>, window_params = [{transform_indices = @transform_0, window_bounds = array<i64: 8, 128>}, {transform_indices = @transform_1, window_bounds = array<i64: 8, 128>}, {transform_indices = @transform_2, window_bounds = array<i64: 1, 8, 128>}]} {
    %c1_i32 = arith.constant 1 : i32
    %0 = arith.muli %arg0, %c1_i32 : i32
    %1 = arith.addi %0, %arg1 : i32
    %c0_i32 = arith.constant 0 : i32
    %2 = arith.cmpi eq, %arg1, %c0_i32 : i32
    %3 = arith.extui %2 : i1 to i32
    %c0_i32_0 = arith.constant 0 : i32
    %4 = arith.cmpi ne, %3, %c0_i32_0 : i32
    scf.if %4 {
      %cst = arith.constant 0.000000e+00 : f32
      %15 = vector.broadcast %cst : f32 to vector<8x128xf32>
      %c0_7 = arith.constant 0 : index
      %c0_8 = arith.constant 0 : index
      %c0_9 = arith.constant 0 : index
      %16 = vector.load %arg4[%c0_7, %c0_8, %c0_9] : memref<1x8x128xf32, #tpu.memory_space<vmem>>, vector<1x8x128xf32>
      %17 = vector.shape_cast %16 : vector<1x8x128xf32> to vector<8x128xf32>
      %18 = vector.shape_cast %15 : vector<8x128xf32> to vector<1x8x128xf32>
      tpu.vector_store %arg4[%c0_7, %c0_8, %c0_9], %18 {strides = array<i32>} : memref<1x8x128xf32, #tpu.memory_space<vmem>>, vector<1x8x128xf32>,
    } else {
    }
    %c0 = arith.constant 0 : index
    %c0_1 = arith.constant 0 : index
    %5 = vector.load %arg2[%c0, %c0_1] : memref<8x128xf32, #tpu.memory_space<vmem>>, vector<8x128xf32>
    %c0_2 = arith.constant 0 : index
    %c0_3 = arith.constant 0 : index
    %6 = vector.load %arg3[%c0_2, %c0_3] : memref<8x128xf32, #tpu.memory_space<vmem>>, vector<8x128xf32>
    %c1_i32_4 = arith.constant 1 : i32
    %7 = arith.addi %1, %c1_i32_4 : i32
    %c8_i32 = arith.constant 8 : i32
    %8 = arith.muli %7, %c8_i32 : i32
    %c16_i32 = arith.constant 16 : i32
    %9 = arith.cmpi sle, %8, %c16_i32 : i32
    %10 = arith.extui %9 : i1 to i32
    %c0_i32_5 = arith.constant 0 : i32
    %11 = arith.cmpi ne, %10, %c0_i32_5 : i32
    scf.if %11 {
      %15 = math.absf %5 : vector<8x128xf32>
      %cst = arith.constant 0.000000e+00 : f32
      %16 = vector.broadcast %cst : f32 to vector<8x128xf32>
      %17 = arith.subf %16, %15 : vector<8x128xf32>
      %18 = math.exp %17 : vector<8x128xf32>
      %cst_7 = arith.constant 1.000000e+00 : f32
      %19 = vector.broadcast %cst_7 : f32 to vector<8x128xf32>
      %20 = arith.addf %19, %18 : vector<8x128xf32>
      %cst_8 = arith.constant 0.000000e+00 : f32
      %21 = vector.broadcast %cst_8 : f32 to vector<8x128xf32>
      %22 = arith.maximumf %5, %21 : vector<8x128xf32>
      %23 = arith.mulf %5, %6 : vector<8x128xf32>
      %24 = arith.subf %22, %23 : vector<8x128xf32>
      %25 = math.log %20 : vector<8x128xf32>
      %26 = arith.addf %24, %25 : vector<8x128xf32>
      %27 = tpu.reciprocal %20 {approx = true} : vector<8x128xf32> -> vector<8x128xf32>
      %28 = arith.mulf %20, %27 : vector<8x128xf32>
      %cst_9 = arith.constant 2.000000e+00 : f32
      %29 = vector.broadcast %cst_9 : f32 to vector<8x128xf32>
      %30 = arith.subf %29, %28 : vector<8x128xf32>
      %31 = arith.mulf %27, %30 : vector<8x128xf32>
      %cst_10 = arith.constant 0.000000e+00 : f32
      %32 = vector.broadcast %cst_10 : f32 to vector<8x128xf32>
      %33 = arith.cmpf oge, %5, %32 : vector<8x128xf32>
      %cst_11 = arith.constant 1.000000e+00 : f32
      %34 = vector.broadcast %cst_11 : f32 to vector<8x128xf32>
      %35 = arith.select %33, %34, %18 : vector<8x128xi1>, vector<8x128xf32>
      %36 = arith.mulf %35, %31 : vector<8x128xf32>
      %37 = arith.subf %36, %6 : vector<8x128xf32>
      %cst_12 = arith.constant 1.000000e+00 : f32
      %38 = vector.broadcast %cst_12 : f32 to vector<8x128xf32>
      %39 = arith.subf %37, %38 : vector<8x128xf32>
      %cst_13 = arith.constant 19.9600792 : f32
      %40 = vector.broadcast %cst_13 : f32 to vector<8x128xf32>
      %41 = arith.mulf %39, %40 : vector<8x128xf32>
      %42 = math.exp %41 : vector<8x128xf32>
      %cst_14 = arith.constant 1.000000e+00 : f32
      %43 = vector.broadcast %cst_14 : f32 to vector<8x128xf32>
      %44 = arith.subf %43, %42 : vector<8x128xf32>
      %45 = arith.mulf %26, %44 : vector<8x128xf32>
      %c0_15 = arith.constant 0 : index
      %c0_16 = arith.constant 0 : index
      %c0_17 = arith.constant 0 : index
      %46 = vector.load %arg4[%c0_15, %c0_16, %c0_17] : memref<1x8x128xf32, #tpu.memory_space<vmem>>, vector<1x8x128xf32>
      %47 = vector.shape_cast %46 : vector<1x8x128xf32> to vector<8x128xf32>
      %48 = vector.shape_cast %45 : vector<8x128xf32> to vector<1x8x128xf32>
      %cst_18 = arith.constant dense<0.000000e+00> : vector<8x128xf32>
      %49 = vector.multi_reduction <add>, %48, %cst_18 [0] : vector<1x8x128xf32> to vector<8x128xf32>
      %50 = arith.addf %47, %49 : vector<8x128xf32>
      %c0_19 = arith.constant 0 : index
      %c0_20 = arith.constant 0 : index
      %c0_21 = arith.constant 0 : index
      %51 = vector.load %arg4[%c0_19, %c0_20, %c0_21] : memref<1x8x128xf32, #tpu.memory_space<vmem>>, vector<1x8x128xf32>
      %52 = vector.shape_cast %51 : vector<1x8x128xf32> to vector<8x128xf32>
      %53 = vector.shape_cast %50 : vector<8x128xf32> to vector<1x8x128xf32>
      tpu.vector_store %arg4[%c0_19, %c0_20, %c0_21], %53 {strides = array<i32>} : memref<1x8x128xf32, #tpu.memory_space<vmem>>, vector<1x8x128xf32>,
    } else {
    }
    %true = arith.constant true
    %12 = arith.xori %9, %true : i1
    %13 = arith.extui %12 : i1 to i32
    %c0_i32_6 = arith.constant 0 : i32
    %14 = arith.cmpi ne, %13, %c0_i32_6 : i32
    scf.if %14 {
      %c8_i32_7 = arith.constant 8 : i32
      %15 = arith.muli %1, %c8_i32_7 : i32
      %c16_i32_8 = arith.constant 16 : i32
      %16 = arith.subi %c16_i32_8, %15 : i32
      %17 = tpu.iota {dimensions = array<i32: 0>} : vector<8x128xi32>
      %18 = vector.broadcast %16 : i32 to vector<8x128xi32>
      %19 = arith.cmpi slt, %17, %18 : vector<8x128xi32>
      %cst = arith.constant 1.000000e+02 : f32
      %20 = vector.broadcast %cst : f32 to vector<8x128xf32>
      %21 = arith.select %19, %5, %20 : vector<8x128xi1>, vector<8x128xf32>
      %cst_9 = arith.constant 1.000000e+00 : f32
      %22 = vector.broadcast %cst_9 : f32 to vector<8x128xf32>
      %23 = arith.select %19, %6, %22 : vector<8x128xi1>, vector<8x128xf32>
      %24 = math.absf %21 : vector<8x128xf32>
      %cst_10 = arith.constant 0.000000e+00 : f32
      %25 = vector.broadcast %cst_10 : f32 to vector<8x128xf32>
      %26 = arith.subf %25, %24 : vector<8x128xf32>
      %27 = math.exp %26 : vector<8x128xf32>
      %cst_11 = arith.constant 1.000000e+00 : f32
      %28 = vector.broadcast %cst_11 : f32 to vector<8x128xf32>
      %29 = arith.addf %28, %27 : vector<8x128xf32>
      %cst_12 = arith.constant 0.000000e+00 : f32
      %30 = vector.broadcast %cst_12 : f32 to vector<8x128xf32>
      %31 = arith.maximumf %21, %30 : vector<8x128xf32>
      %32 = arith.mulf %21, %23 : vector<8x128xf32>
      %33 = arith.subf %31, %32 : vector<8x128xf32>
      %34 = math.log %29 : vector<8x128xf32>
      %35 = arith.addf %33, %34 : vector<8x128xf32>
      %36 = tpu.reciprocal %29 {approx = true} : vector<8x128xf32> -> vector<8x128xf32>
      %37 = arith.mulf %29, %36 : vector<8x128xf32>
      %cst_13 = arith.constant 2.000000e+00 : f32
      %38 = vector.broadcast %cst_13 : f32 to vector<8x128xf32>
      %39 = arith.subf %38, %37 : vector<8x128xf32>
      %40 = arith.mulf %36, %39 : vector<8x128xf32>
      %cst_14 = arith.constant 0.000000e+00 : f32
      %41 = vector.broadcast %cst_14 : f32 to vector<8x128xf32>
      %42 = arith.cmpf oge, %21, %41 : vector<8x128xf32>
      %cst_15 = arith.constant 1.000000e+00 : f32
      %43 = vector.broadcast %cst_15 : f32 to vector<8x128xf32>
      %44 = arith.select %42, %43, %27 : vector<8x128xi1>, vector<8x128xf32>
      %45 = arith.mulf %44, %40 : vector<8x128xf32>
      %46 = arith.subf %45, %23 : vector<8x128xf32>
      %cst_16 = arith.constant 1.000000e+00 : f32
      %47 = vector.broadcast %cst_16 : f32 to vector<8x128xf32>
      %48 = arith.subf %46, %47 : vector<8x128xf32>
      %cst_17 = arith.constant 19.9600792 : f32
      %49 = vector.broadcast %cst_17 : f32 to vector<8x128xf32>
      %50 = arith.mulf %48, %49 : vector<8x128xf32>
      %51 = math.exp %50 : vector<8x128xf32>
      %cst_18 = arith.constant 1.000000e+00 : f32
      %52 = vector.broadcast %cst_18 : f32 to vector<8x128xf32>
      %53 = arith.subf %52, %51 : vector<8x128xf32>
      %54 = arith.mulf %35, %53 : vector<8x128xf32>
      %cst_19 = arith.constant 0.000000e+00 : f32
      %55 = vector.broadcast %cst_19 : f32 to vector<8x128xf32>
      %56 = arith.select %19, %54, %55 : vector<8x128xi1>, vector<8x128xf32>
      %c0_20 = arith.constant 0 : index
      %c0_21 = arith.constant 0 : index
      %c0_22 = arith.constant 0 : index
      %57 = vector.load %arg4[%c0_20, %c0_21, %c0_22] : memref<1x8x128xf32, #tpu.memory_space<vmem>>, vector<1x8x128xf32>
      %58 = vector.shape_cast %57 : vector<1x8x128xf32> to vector<8x128xf32>
      %59 = vector.shape_cast %56 : vector<8x128xf32> to vector<1x8x128xf32>
      %cst_23 = arith.constant dense<0.000000e+00> : vector<8x128xf32>
      %60 = vector.multi_reduction <add>, %59, %cst_23 [0] : vector<1x8x128xf32> to vector<8x128xf32>
      %61 = arith.addf %58, %60 : vector<8x128xf32>
      %c0_24 = arith.constant 0 : index
      %c0_25 = arith.constant 0 : index
      %c0_26 = arith.constant 0 : index
      %62 = vector.load %arg4[%c0_24, %c0_25, %c0_26] : memref<1x8x128xf32, #tpu.memory_space<vmem>>, vector<1x8x128xf32>
      %63 = vector.shape_cast %62 : vector<1x8x128xf32> to vector<8x128xf32>
      %64 = vector.shape_cast %61 : vector<8x128xf32> to vector<1x8x128xf32>
      tpu.vector_store %arg4[%c0_24, %c0_25, %c0_26], %64 {strides = array<i32>} : memref<1x8x128xf32, #tpu.memory_space<vmem>>, vector<1x8x128xf32>,
    } else {
    }
    return
  }
  func.func @transform_0(%arg0: i32, %arg1: i32) -> (i32, i32) {
    %c1_i32 = arith.constant 1 : i32
    %0 = arith.muli %arg0, %c1_i32 : i32
    %1 = arith.addi %0, %arg1 : i32
    %c1_i32_0 = arith.constant 1 : i32
    %2 = arith.minsi %1, %c1_i32_0 : i32
    %c0_i32 = arith.constant 0 : i32
    %c0_i32_1 = arith.constant 0 : i32
    return %2, %c0_i32 : i32, i32
  }
  func.func @transform_1(%arg0: i32, %arg1: i32) -> (i32, i32) {
    %c1_i32 = arith.constant 1 : i32
    %0 = arith.muli %arg0, %c1_i32 : i32
    %1 = arith.addi %0, %arg1 : i32
    %c1_i32_0 = arith.constant 1 : i32
    %2 = arith.minsi %1, %c1_i32_0 : i32
    %c0_i32 = arith.constant 0 : i32
    %c0_i32_1 = arith.constant 0 : i32
    return %2, %c0_i32 : i32, i32
  }
  func.func @transform_2(%arg0: i32, %arg1: i32) -> (i32, i32, i32) {
    %c0_i32 = arith.constant 0 : i32
    %c0_i32_0 = arith.constant 0 : i32
    %c0_i32_1 = arith.constant 0 : i32
    return %arg0, %c0_i32, %c0_i32_0 : i32, i32, i32
  }
}

</mosaic_0001>

<bundles_post_ra>
// kernel: tpu_custom_call.1
= control target key start
LH: loop header
LB: loop body
LE: loop exit
PB: predicated region body
PF: predicated region fallthrough
CT: control target
= control target key end

     0   :  { %s972_s0 = inlined_call_operand.hbm [shape: f32[16,128], index: 0, kind: input, shape index: {}]   ;;  %s973_s1 = inlined_call_operand.hbm [shape: f32[16,128], index: 1, kind: input, shape index: {}]   ;;  %s974_s2 = inlined_call_operand.hbm [shape: f32[2,8,128], index: 2, kind: output, shape index: {}]  }
   0x1   :  { %975 = sst [smem:[#allocation11_spill]] %s972_s0 }
   0x2   :  { %7 = vsyncpa [#allocation3], 0 }
   0x3   :  { %9 = vsyncpa [#allocation3 + $0x1], 0 }
   0x4   :  { %10 = vsyncpa [#allocation6], 0 }
   0x5   :  { %12 = vsyncpa [#allocation6 + $0x1], 0 }
   0x6   :  { %13 = vsyncpa [#allocation4], 0 }
   0x7   :  { %15 = vsyncpa [#allocation4 + $0x1], 0  ;;  %s749_s9 = smov 0   ;;  %s751_s10 = smov 0  }
   0x8   :  { %s753_s11 = smov 0   ;;  %s755_s12 = smov 0  }
   0x9   :  { %s757_s13 = smov 0   ;;  %s759_s14 = smov 0  }
   0xa   :  { %s761_s15 = smov 0   ;;  %s763_s16 = smov 0  }
   0xb   :  { %s765_s17 = smov 0  }
   0xc LB: > { %s432_s18 = sadd.s32 4294967295, %s728_s17   ;;  %s433_s19 = sadd.s32 4294967294, %s728_s17   ;;  %s728_s17 = sphi %s765_s17, %s21_s17   ;;  %s724_s16 = sphi %s763_s16, %s993_s16   ;;  %s720_s15 = sphi %s761_s15, %s992_s15   ;;  %s716_s14 = sphi %s759_s14, %s991_s14   ;;  %s712_s13 = sphi %s757_s13, %s990_s13   ;;  %s708_s12 = sphi %s755_s12, %s989_s12   ;;  %s704_s11 = sphi %s753_s11, %s988_s11   ;;  %s700_s10 = sphi %s751_s10, %s987_s10   ;;  %s696_s9 = sphi %s749_s9, %s986_s9  }
   0xd   : > { %s33_s20 = sadd.s32 1, %s724_s16  ;;  %p38_p0 = scmp.lt.s32.totalorder %s724_s16, 1 }
   0xe   : > { %p35_p1 = scmp.ge.s32.totalorder %s33_s20, 2  ;;  %s46_s21 = sadd.s32 1, %s716_s14 }
   0xf   : > { %s798_s22 = scalar_select %p38_p0, %s724_s16, 1 }
  0x10   : > { %s995_s20 = smov (%p35_p1, %s33_s20), 0  ;;  %p53_p2 = scmp.ne.s32.totalorder %s716_s14, %s712_s13 }
  0x11   : > { %p54_p3 = scmp.eq.s32.totalorder %s728_s17, 0  ;;  %p41_p4 = scmp.lt.s32.totalorder %s995_s20, 1 }
  0x12   : > { %p59_p5 = scmp.ne.s32.totalorder %s712_s13, %s708_s12  ;;  %p60_p7 = scmp.eq.s32.totalorder %s432_s18, 0 }
  0x13   : > { %p807_p6 = por %p54_p3, %p53_p2  ;;  %s101_s26 = ssub.s32 %s724_s16, %s995_s20 }
  0x14   : > { %s42_s24 = scalar_select %p41_p4, %s995_s20, 1 }
  0x15   : > { %p812_p8 = por %p60_p7, %p59_p5  ;;  %p102_p9 = scmp.eq.s32.totalorder %s101_s26, 0 }
  0x16   : > { %s43_s27 = ssub.s32 %s798_s22, %s42_s24  ;;  %s104_s28 = sadd.s32 1, %s704_s11 }
  0x17   : > { %p44_p10 = scmp.eq.s32.totalorder %s43_s27, 0  ;;  %p114_p11 = scmp.ne.s32.totalorder %s704_s11, %s700_s10 }
  0x18   : > { %s821_s29 = scalar_select %p102_p9, %s704_s11, %s104_s28  }
  0x19   : > { %s824_s30 = scalar_select %p44_p10, %s716_s14, %s46_s21  }
  0x1a   : > { %p115_p12 = scmp.eq.s32.totalorder %s432_s18, 1  ;;  %p120_p13 = scmp.ne.s32.totalorder %s700_s10, %s696_s9 }
  0x1b   : > { %p121_p0 = scmp.eq.s32.totalorder %s433_s19, 1  ;;  %p473_p4 = scmp.lt.s32.totalorder %s728_s17, 2 }
  0x1c   : > { %p830_p1 = por %p115_p12, %p114_p11  ;;  %s841_s5 = sand.u32 1, %s716_s14  }
  0x1d   : > { %p835_p3 = por %p121_p0, %p120_p13  ;;  %s437_s6 = sshll.u32 %s798_s22, 7 }
  0x1e   : > { %s436_s7 = sshll.u32 %s841_s5, 3  ;;  %s980_s0 = sld [smem:[#allocation11_spill]] }
  0x1f   : > { %s145_s19 = scalar_lea.vmem [#allocation2], %s436_s7  ;;  %p850_p5 = pnand %p473_p4, %p807_p6 }
  0x20   : > { %s155_s21 = sshll.u32 %s145_s19, 4  ;;  %p440_p7 = scmp.ge.s32.totalorder %s728_s17, 1  ;;  %s156_s21 = int_to_ptr.vmem [resolvable:$true] %s155_s21 }
  0x21   : > { %p181_p9 = scmp.lt.s32.totalorder %s728_s17, 3  ;;  %s142_s26 = scalar_lea.sflag [#allocation3], %s841_s5 }
  0x22   : > { %p566_p10 = pneg %p850_p5  ;;  %s577_s22 = scalar_lea.vmem %s156_s21, 128 }
  0x23   : > { %p578_p11 = scmp.ne.s32.totalorder %s156_s21, %s577_s22  ;;  %s730_s27 = smov [#allocation2]  }
  0x24   : > { %s153_s18 = scalar_lea.hbm %s980_s0, %s437_s6  ;;  %s582_s23 = sshll.u32 %s730_s27, 4  ;;  %s583_s23 = int_to_ptr.vmem [resolvable:$false] %s582_s23 }
  0x25   : > { %p580_p12 = pnand %p578_p11, %p566_p10  ;;  %s584_s28 = scalar_lea.vmem %s583_s23, 256 }
  0x26   : > { %p585_p6 = scmp.lt.s32.totalorder %s156_s21, %s583_s23  ;;  %p586_p0 = scmp.lt.s32.totalorder %s584_s28, %s577_s22 }
  0x27   : > { %p581_p13 = pneg %p580_p12 }
  0x28   : > { %p587_p4 = por %p586_p0, %p585_p6 }
  0x2a   : > { %p588_p2 = pnand %p587_p4, %p581_p13 }
  0x2c   : > { %591 = shalt.err (!%p588_p2)
}
  0x2d   : > { %465 = dma.hbm_to_vmem [thread:$0]  (!%p850_p5), %s153_s18, 128, %s156_s21, %s142_s26  }
  0x2e   : > { %p868_p11 = pnand %p440_p7, %p181_p9  ;;  %s174_s22 = scalar_lea.hbm %s973_s1, %s437_s6 }
  0x2f   : > { %s166_s27 = scalar_lea.vmem [#allocation5], %s436_s7  ;;  %s163_s28 = scalar_lea.sflag [#allocation6], %s841_s5 }
  0x30   : > { %s176_s23 = sshll.u32 %s166_s27, 4  ;;  %s731_s18 = smov [#allocation5]   ;;  %s177_s23 = int_to_ptr.vmem [resolvable:$true] %s176_s23 }
  0x31   : > { %s605_s0 = scalar_lea.vmem %s177_s23, 128  ;;  %s610_s21 = sshll.u32 %s731_s18, 4  ;;  %s611_s21 = int_to_ptr.vmem [resolvable:$false] %s610_s21 }
  0x32   : > { %p606_p2 = scmp.ne.s32.totalorder %s177_s23, %s605_s0  ;;  %s612_s26 = scalar_lea.vmem %s611_s21, 256 }
  0x33   : > { %p613_p7 = scmp.lt.s32.totalorder %s177_s23, %s611_s21  ;;  %p614_p9 = scmp.lt.s32.totalorder %s612_s26, %s605_s0 }
  0x34   : > { %p608_p12 = pnand %p606_p2, %p566_p10 }
  0x35   : > { %p615_p6 = por %p614_p9, %p613_p7 }
  0x36   : > { %p609_p13 = pneg %p608_p12 }
  0x38   : > { %p616_p0 = pnand %p615_p6, %p609_p13 }
  0x3a   : > { %619 = shalt.err (!%p616_p0)
}
  0x3b   : > { %468 = dma.hbm_to_vmem [thread:$0]  (!%p850_p5), %s174_s22, 128, %s177_s23, %s163_s28  }
  0x3c   : > { %185 = sbr.rel (%p868_p11) target bundleno = 260 (0x104), region = 28  ;;  %s187_s5 = sand.u32 (!%p868_p11), 1, %s712_s13  }
  0x3d   : > { %s441_s6 = sshll.u32 (!%p868_p11), %s187_s5, 3  ;;  %s188_s7 = scalar_lea.sflag (!%p868_p11), [#allocation3], %s187_s5 }
  0x3e   : > { %s191_s12 = scalar_lea.vmem (!%p868_p11), [#allocation2], %s441_s6 }
  0x41   : > { %683 = dma.done.wait (%p812_p8), %s188_s7, 128  }
  0x42   : > { %685 = vsyncadd (%p812_p8), %s188_s7, 4294967168  ;;  %s197_s0 = scalar_lea.sflag [#allocation6], %s187_s5  ;;  %s200_s19 = scalar_lea.vmem [#allocation5], %s441_s6 }
  0x43   : > { %687 = dma.done.wait (%p812_p8), %s197_s0, 128  }
  0x44   : > { %689 = vsyncadd (%p812_p8), %s197_s0, 4294967168  ;;  %s223_s24 = sand.u32 1, %s700_s10   ;;  %s454_s8 = sshll.u32 %s720_s15, 3  ;;  %v732_v0 = vmov 0.0   ;;  %v238_v1 = vld [vmem:[%s191_s12] sm:$0xff]  ;;  %v239_v2 = vld [vmem:[%s200_s19] sm:$0xff] }
  0x45   : > { %s443_s22 = sshll.u32 %s223_s24, 3  ;;  %s898_s27 = sadd.s32 8, %s454_s8 }
  0x46   : > { %s900_s23 = scalar_lea.vmem [#allocation7], %s443_s22  ;;  %p445_p8 = scmp.gt.s32.totalorder %s898_s27, 16 }
  0x47   : > { %237 = vst [vmem:[%s900_s23] sm:$0xff] %v732_v0 }
  0x48   : > { %245 = sbr.rel (%p445_p8) target bundleno = 150 (0x96), region = 44 }
  0x4d   : > { %v246_v3 = vand.u32 2147483647, %v238_v1  ;;  %vm261_vm0 = vcmp.ge.f32.partialorder %v238_v1, 0.0  ;;  %v251_v18 = vmax.f32 %v238_v1, 0.0  ;;  %v252_v19 = vmul.f32 %v239_v2, %v238_v1 }
  0x4e   : > { %v271_v26 = vld [vmem:[%s900_s23] sm:$0xff] }
  0x4f   : > { %v247_v4 = vsub.f32 0.0, %v246_v3  ;;  %v253_v21 = vsub.f32 %v251_v18, %v252_v19 }
  0x51   : > { %v248_v5 = vmul.f32 1.442695, %v247_v4 }
  0x53   : > { %548 = vpow2.f32 %v248_v5 }
  0x60   : > { %v549_v6 = vpop.eup %548 }
  0x61   : > { %v250_v7 = vadd.f32 1.0, %v549_v6  ;;  %v262_v11 = vsel %vm261_vm0, 1.0, %v549_v6 }
  0x63   : > { %550 = vrcp.f32 %v250_v7 }
  0x64   : > { %552 = vlog2.f32 %v250_v7 }
  0x70   : > { %v551_v8 = vpop.eup %550 }
  0x71   : > { %v258_v9 = vmul.f32 %v551_v8, %v250_v7  ;;  %v553_v20 = vpop.eup %552 }
  0x72   : > { %v255_v22 = vmul.f32 0.6931472, %v553_v20 }
  0x73   : > { %v259_v10 = vsub.f32 2.0, %v258_v9 }
  0x74   : > { %v256_v23 = vadd.f32 %v255_v22, %v253_v21 }
  0x75   : > { %v260_v12 = vmul.f32 %v551_v8, %v259_v10 }
  0x77   : > { %v263_v13 = vmul.f32 %v262_v11, %v260_v12 }
  0x79   : > { %v264_v14 = vsub.f32 %v263_v13, %v239_v2 }
  0x7b   : > { %v446_v15 = vadd.f32 -1.0, %v264_v14 }
  0x7d   : > { %v266_v16 = vmul.f32 19.96008, %v446_v15 }
  0x7f   : > { %v267_v17 = vmul.f32 1.442695, %v266_v16 }
  0x81   : > { %554 = vpow2.f32 %v267_v17 }
  0x8e   : > { %v555_v24 = vpop.eup %554 }
  0x8f   : > { %v269_v25 = vsub.f32 1.0, %v555_v24 }
  0x91   : > { %v270_v27 = vmul.f32 %v269_v25, %v256_v23 }
  0x93   : > { %v273_v28 = vadd.f32 %v271_v26, %v270_v27 }
  0x95   : > { %274 = vst [vmem:[%s900_s23] sm:$0xff] %v273_v28 }
  0x96 PF: > { %p447_p5 = scmp.le.s32.totalorder %s898_s27, 16 }
  0x97   : > { %s280_s25 = ssub.s32 (!%p447_p5), 16, %s454_s8 }
  0x98   : > { %278 = sbr.rel (%p447_p5) target bundleno = 237 (0xed), region = 48 }
  0x9d   : > { %v281_v29 = vlaneseq  ;;  %v283_v30 = vstv %s280_s25  ;;  %v313_v59 = vld [vmem:[%s900_s23] sm:$0xff] }
  0x9f   : > { %v282_v31 = vshrl.u32 %v281_v29, 7 }
  0xa1   : > { %vm909_vm1 = vcmp.lt.s32.totalorder %v282_v31, %v283_v30 }
  0xa2   : > { %v285_v33 = vsel %vm909_vm1, %v238_v1, 100.0  ;;  %v286_v44 = vsel %vm909_vm1, %v239_v2, 1.0 }
  0xa3   : > { %v287_v34 = vand.u32 2147483647, %v285_v33  ;;  %vm302_vm2 = vcmp.ge.f32.partialorder %v285_v33, 0.0  ;;  %v292_v50 = vmax.f32 %v285_v33, 0.0  ;;  %v293_v51 = vmul.f32 %v286_v44, %v285_v33 }
  0xa5   : > { %v288_v35 = vsub.f32 0.0, %v287_v34  ;;  %v294_v53 = vsub.f32 %v292_v50, %v293_v51 }
  0xa7   : > { %v289_v36 = vmul.f32 1.442695, %v288_v35 }
  0xa9   : > { %556 = vpow2.f32 %v289_v36 }
  0xb6   : > { %v557_v37 = vpop.eup %556 }
  0xb7   : > { %v291_v38 = vadd.f32 1.0, %v557_v37  ;;  %v303_v42 = vsel %vm302_vm2, 1.0, %v557_v37 }
  0xb9   : > { %558 = vrcp.f32 %v291_v38 }
  0xba   : > { %560 = vlog2.f32 %v291_v38 }
  0xc6   : > { %v559_v39 = vpop.eup %558 }
  0xc7   : > { %v299_v40 = vmul.f32 %v559_v39, %v291_v38  ;;  %v561_v52 = vpop.eup %560 }
  0xc8   : > { %v296_v54 = vmul.f32 0.6931472, %v561_v52 }
  0xc9   : > { %v300_v41 = vsub.f32 2.0, %v299_v40 }
  0xca   : > { %v297_v55 = vadd.f32 %v296_v54, %v294_v53 }
  0xcb   : > { %v301_v43 = vmul.f32 %v559_v39, %v300_v41 }
  0xcd   : > { %v304_v45 = vmul.f32 %v303_v42, %v301_v43 }
  0xcf   : > { %v305_v46 = vsub.f32 %v304_v45, %v286_v44 }
  0xd1   : > { %v449_v47 = vadd.f32 -1.0, %v305_v46 }
  0xd3   : > { %v307_v48 = vmul.f32 19.96008, %v449_v47 }
  0xd5   : > { %v308_v49 = vmul.f32 1.442695, %v307_v48 }
  0xd7   : > { %562 = vpow2.f32 %v308_v49 }
  0xe4   : > { %v563_v56 = vpop.eup %562 }
  0xe5   : > { %v310_v57 = vsub.f32 1.0, %v563_v56 }
  0xe7   : > { %v311_v58 = vmul.f32 %v310_v57, %v297_v55 }
  0xe9   : > { %v312_v60 = vsel %vm909_vm1, %v311_v58, 0.0 }
  0xea   : > { %v315_v61 = vadd.f32 %v313_v59, %v312_v60 }
  0xec   : > { %316 = vst [vmem:[%s900_s23] sm:$0xff] %v315_v61 }
  0xed PF: > { %s451_s28 = sshll.u32 %s720_s15, 7  ;;  %s331_s5 = sshll.u32 %s900_s23, 4  ;;  %s332_s5 = int_to_ptr.vmem [resolvable:$true] %s331_s5 }
  0xee   : > { %s329_s26 = scalar_lea.hbm %s974_s2, %s451_s28  ;;  %s318_s6 = scalar_lea.sflag [#allocation4], %s223_s24 }
  0xef   : > { %s620_s7 = scalar_lea.vmem %s332_s5, 128  ;;  %s733_s12 = smov [#allocation7]  }
  0xf0   : > { %p621_p10 = scmp.ne.s32.totalorder %s332_s5, %s620_s7  ;;  %s624_s0 = sshll.u32 %s733_s12, 4  ;;  %s625_s0 = int_to_ptr.vmem [resolvable:$false] %s624_s0 }
  0xf1   : > { %s626_s19 = scalar_lea.vmem %s625_s0, 256  ;;  %p627_p2 = scmp.lt.s32.totalorder %s332_s5, %s625_s0 }
  0xf2   : > { %p622_p4 = pnand %p621_p10, %p830_p1  ;;  %p628_p12 = scmp.lt.s32.totalorder %s626_s19, %s620_s7 }
  0xf4   : > { %p623_p11 = pneg %p622_p4  ;;  %p629_p13 = por %p628_p12, %p627_p2 }
  0xf6   : > { %p630_p7 = pnand %p629_p13, %p623_p11 }
  0xf8   : > { %633 = shalt.err (!%p630_p7)
}
  0xf9   : > { %s634_s15 = scalar_lea.hbm %s329_s26, 128  ;;  %s638_s22 = scalar_lea.hbm %s974_s2, 256 }
  0xfa   : > { %p635_p9 = scmp.ne.s32.totalorder %s329_s26, %s634_s15  ;;  %p639_p8 = scmp.lt.s32.totalorder %s329_s26, %s974_s2 }
  0xfb   : > { %p640_p5 = scmp.lt.s32.totalorder %s638_s22, %s634_s15 }
  0xfc   : > { %p636_p6 = pnand %p635_p9, %p830_p1 }
  0xfd   : > { %p641_p10 = por %p640_p5, %p639_p8 }
  0xfe   : > { %p637_p0 = pneg %p636_p6 }
 0x100   : > { %p642_p4 = pnand %p641_p10, %p637_p0 }
 0x102   : > { %645 = shalt.err (!%p642_p4)
}
 0x103   : > { %460 = dma.vmem_to_hbm [thread:$0]  (%p830_p1), %s332_s5, 128, %s329_s26, %s318_s6  }
 0x104 PF: > { %s343_s25 = sand.u32 1, %s696_s9   ;;  %p985_p11 = scmp.ge.s32.totalorder %s728_s17, 2 }
 0x105   : > { %s344_s28 = scalar_lea.sflag [#allocation4], %s343_s25 }
 0x106   : > { %p470_p2 = pnand %p985_p11, %p835_p3 }
 0x108   : > { %p471_p12 = pneg %p470_p2 }
 0x10a   : > { %691 = dma.done.wait (%p471_p12), %s344_s28, 128  }
 0x10b   : > { %693 = vsyncadd (%p471_p12), %s344_s28, 4294967168  ;;  %s21_s17 = sadd.s32 1, %s728_s17   ;;  %s986_s9 = smov %s700_s10 }
 0x10c   : > { %p18_p13 = scmp.ge.s32.totalorder %s21_s17, 4   ;;  %s987_s10 = smov %s704_s11 }
 0x10d   : > { %s988_s11 = smov %s821_s29  ;;  %s989_s12 = smov %s712_s13 }
 0x10e   : > { %s990_s13 = smov %s716_s14  ;;  %s991_s14 = smov %s824_s30 }
 0x10f   : > { %s992_s15 = smov %s724_s16  ;;  %s993_s16 = smov %s995_s20 }
 0x110   :  { %20 = sbr.rel (!%p18_p13) target bundleno = 12 (0xc), region = 98 }
 0x115   :  { %349 = vsyncpa [#allocation3], 1 }
 0x116   :  { %351 = vsyncpa [#allocation3 + $0x1], 1 }
 0x117   :  { %352 = vsyncpa [#allocation6], 1 }
 0x118   :  { %354 = vsyncpa [#allocation6 + $0x1], 1 }
 0x119   :  { %355 = vsyncpa [#allocation4], 1 }
 0x11a   :  { %357 = vsyncpa [#allocation4 + $0x1], 1 }

</bundles_post_ra>
